<compile_context>
chip_gen: v5e
topology: v5e:2x2
jax: 0.10.0
libtpu: 0.0.40
codegen_flags: <defaults>
</compile_context>

<pallas_src>
import jax
import jax.numpy as jnp
from jax.experimental import pallas as pl
from jax.experimental.pallas import tpu as pltpu


# ----------------------------- kernels ------------------------------------- #

def _cat_kernel(x_ref, w_ref, b_ref, o_ref):
    # x_ref: [TN, K=L*H]   w_ref: [K, HP]   b_ref: [1, HP]   o_ref: [TN, HP]
    x = jnp.maximum(x_ref[...], 0.0)                              # ReLU (VPU)
    y = jnp.dot(x, w_ref[...], preferred_element_type=jnp.float32)  # single MXU matmul
    o_ref[...] = (y + b_ref[...]).astype(o_ref.dtype)


def _max_kernel(xs_ref, w_ref, b_ref, o_ref):
    # xs_ref: [L, TN, H]   w_ref: [H, HP]   b_ref: [1, HP]   o_ref: [TN, HP]
    x = jnp.max(xs_ref[...], axis=0)                              # JK 'max' (VPU, one load)
    x = jnp.maximum(x, 0.0)                                       # ReLU
    y = jnp.dot(x, w_ref[...], preferred_element_type=jnp.float32)
    o_ref[...] = (y + b_ref[...]).astype(o_ref.dtype)


# ----------------------------- wrapper -------------------------------------- #

def _round_up(x, m):
    return (x + m - 1) // m * m


def la_aggregator_pallas(xs_stacked, weight, bias, *, mode="cat",
                         tile_n=512, vmem_budget_bytes=48 << 20):
    """LaAggregator forward (with_bn=False).

    xs_stacked : [L, N, H]  stacked per-layer node features
    weight     : mode='cat' -> [L*H, H] or [L, H, H]   (Linear(L*H, H).weight.T)
                 mode='max' -> [H, H]                  (Linear(H, H).weight.T)
                 i.e. (in_features, out_features) layout.
    bias       : [H]
    returns    : [N, H]
    """
    L, N, H = xs_stacked.shape
    dtype = xs_stacked.dtype
    itemsize = jnp.dtype(dtype).itemsize

    if mode == "cat":
        K = L * H
    elif mode == "max":
        K = H
    else:
        raise NotImplementedError(f"mode={mode!r} not supported in this kernel")

    weight2d = weight.reshape(K, H)

    # --- lane-dense output: pad out_features to a multiple of 128 ----------- #
    HP = _round_up(H, 128)
    w_p = jnp.pad(weight2d, ((0, 0), (0, HP - H))) if HP != H else weight2d
    b_p = jnp.pad(bias, (0, HP - H)) if HP != H else bias
    b_p = b_p.reshape(1, HP)

    # --- choose node tile: big, sublane-aligned, and within VMEM budget ----- #
    tn = min(int(tile_n), _round_up(N, 8))
    tn = max(8, _round_up(tn, 8))

    w_bytes = K * HP * 4 * 2            # resident weight (double-buffered worst case)

    def _vmem_est(t):
        x_bytes = (L * t * H if mode == "max" else t * K) * itemsize * 2
        o_bytes = t * HP * itemsize * 2
        return w_bytes + x_bytes + o_bytes + 2 * HP * 4

    while tn > 8 and _vmem_est(tn) > vmem_budget_bytes:
        tn = max(8, _round_up(tn // 2, 8))

    NP = _round_up(N, tn)
    grid = (NP // tn,)

    # --- wrapper-side layout plumbing (XLA, not the kernel) ------------------ #
    if mode == "cat":
        # [L, N, H] -> [N, L*H]  (== torch.cat(xs, dim=-1))
        x_arg = jnp.transpose(xs_stacked, (1, 0, 2)).reshape(N, K)
        if NP != N:
            x_arg = jnp.pad(x_arg, ((0, NP - N), (0, 0)))
        x_spec = pl.BlockSpec((tn, K), lambda i: (i, 0))
        kernel = _cat_kernel
    else:  # 'max'
        x_arg = xs_stacked
        if NP != N:
            x_arg = jnp.pad(x_arg, ((0, 0), (0, NP - N), (0, 0)))
        x_spec = pl.BlockSpec((L, tn, H), lambda i: (0, i, 0))
        kernel = _max_kernel

    w_spec = pl.BlockSpec((K, HP), lambda i: (0, 0))   # resident across grid
    b_spec = pl.BlockSpec((1, HP), lambda i: (0, 0))   # resident across grid

    vmem_limit = int(min(max(2 * _vmem_est(tn), 32 << 20), 64 << 20))

    out = pl.pallas_call(
        kernel,
        out_shape=jax.ShapeDtypeStruct((NP, HP), dtype),
        grid_spec=pltpu.PrefetchScalarGridSpec(
            num_scalar_prefetch=0,
            grid=grid,
            in_specs=[x_spec, w_spec, b_spec],
            out_specs=pl.BlockSpec((tn, HP), lambda i: (i, 0)),
        ),
        compiler_params=pltpu.CompilerParams(
            dimension_semantics=("parallel",),
            vmem_limit_bytes=vmem_limit,
        ),
    )(x_arg, w_p, b_p)

    # strip row padding and the zero-padded output features
    return out[:N, :H]


# ----------------------------- reference ------------------------------------ #

def la_aggregator_ref(xs_stacked, weight, bias, *, mode="cat"):
    L, N, H = xs_stacked.shape
    if mode == "cat":
        x = jnp.transpose(xs_stacked, (1, 0, 2)).reshape(N, L * H)  # concat(dim=-1)
        w = weight.reshape(L * H, H)
    else:  # max
        x = jnp.max(xs_stacked, axis=0)
        w = weight.reshape(H, H)
    return jnp.maximum(x, 0.0) @ w + bias


# ----------------------------- main ----------------------------------------- #

if __name__ == "__main__":
    key = jax.random.PRNGKey(0)
    L, N, H = 3, 50, 32   # num_layers=3, 50 nodes (not a multiple of 8), hidden=32

    k_x, k_wc, k_bc, k_wm, k_bm = jax.random.split(key, 5)
    xs = jax.random.normal(k_x, (L, N, H), dtype=jnp.float32)

    # mode='cat' parameters: Linear(L*H, H) stored as W.T -> [L*H, H]
    w_cat = jax.random.normal(k_wc, (L * H, H), dtype=jnp.float32) * (1.0 / jnp.sqrt(L * H))
    b_cat = jax.random.normal(k_bc, (H,), dtype=jnp.float32) * 0.01

    # mode='max' parameters: Linear(H, H) stored as W.T -> [H, H]
    w_max = jax.random.normal(k_wm, (H, H), dtype=jnp.float32) * (1.0 / jnp.sqrt(H))
    b_max = jax.random.normal(k_bm, (H,), dtype=jnp.float32) * 0.01

    # default (large-tile) path
    out_cat = jax.block_until_ready(la_aggregator_pallas(xs, w_cat, b_cat, mode="cat"))
    out_max = jax.block_until_ready(la_aggregator_pallas(xs, w_max, b_max, mode="max"))

    # multi-step grid path (forces several tiles + row padding)
    out_cat_t = jax.block_until_ready(
        la_aggregator_pallas(xs, w_cat, b_cat, mode="cat", tile_n=16))
    out_max_t = jax.block_until_ready(
        la_aggregator_pallas(xs, w_max, b_max, mode="max", tile_n=16))

    ref_cat = la_aggregator_ref(xs, w_cat, b_cat, mode="cat")
    ref_max = la_aggregator_ref(xs, w_max, b_max, mode="max")

    assert out_cat.shape == (N, H) and out_max.shape == (N, H)
    assert jnp.allclose(out_cat, ref_cat, atol=1e-4, rtol=1e-4)
    assert jnp.allclose(out_max, ref_max, atol=1e-4, rtol=1e-4)
    assert jnp.allclose(out_cat_t, ref_cat, atol=1e-4, rtol=1e-4)
    assert jnp.allclose(out_max_t, ref_max, atol=1e-4, rtol=1e-4)

    print("KERNEL_OK")
</pallas_src>

<mosaic_0001>
module attributes {stable_mosaic.version = 11 : i64} {
  func.func @_cat_kernel(%arg0: i32, %arg1: memref<56x96xf32, #tpu.memory_space<vmem>>, %arg2: memref<96x128xf32, #tpu.memory_space<vmem>>, %arg3: memref<1x128xf32, #tpu.memory_space<vmem>>, %arg4: memref<56x128xf32, #tpu.memory_space<vmem>>) attributes {dimension_semantics = [#tpu.dimension_semantics<parallel>], iteration_bounds = array<i64: 1>, scalar_prefetch = 0 : i64, scratch_operands = 0 : i64, tpu.core_type = #tpu.core_type<tc>, window_params = [{transform_indices = @transform_0, window_bounds = array<i64: 56, 96>}, {pipeline_mode = #tpu.pipeline_mode<synchronous>, transform_indices = @transform_1, window_bounds = array<i64: 96, 128>}, {pipeline_mode = #tpu.pipeline_mode<synchronous>, transform_indices = @transform_2, window_bounds = array<i64: 1, 128>}, {transform_indices = @transform_3, window_bounds = array<i64: 56, 128>}]} {
    %c0 = arith.constant 0 : index
    %c0_0 = arith.constant 0 : index
    %0 = vector.load %arg1[%c0, %c0_0] : memref<56x96xf32, #tpu.memory_space<vmem>>, vector<56x96xf32>
    %cst = arith.constant 0.000000e+00 : f32
    %1 = vector.broadcast %cst : f32 to vector<56x96xf32>
    %2 = arith.maximumf %0, %1 : vector<56x96xf32>
    %c0_1 = arith.constant 0 : index
    %c0_2 = arith.constant 0 : index
    %3 = vector.load %arg2[%c0_1, %c0_2] : memref<96x128xf32, #tpu.memory_space<vmem>>, vector<96x128xf32>
    %cst_3 = arith.constant dense<0.000000e+00> : vector<56x128xf32>
    %4 = tpu.matmul %2, %3, %cst_3 {dimension_numbers = #tpu.dot_dimension_numbers<[1], [0], [0], [1], [0, 0, 1, 1], [], []>} : vector<56x96xf32>, vector<96x128xf32>, vector<56x128xf32> -> vector<56x128xf32>
    %c0_4 = arith.constant 0 : index
    %c0_5 = arith.constant 0 : index
    %5 = vector.load %arg3[%c0_4, %c0_5] : memref<1x128xf32, #tpu.memory_space<vmem>>, vector<1x128xf32>
    %6 = vector.broadcast %5 : vector<1x128xf32> to vector<56x128xf32>
    %7 = arith.addf %4, %6 : vector<56x128xf32>
    %c0_6 = arith.constant 0 : index
    %c0_7 = arith.constant 0 : index
    %8 = vector.load %arg4[%c0_6, %c0_7] : memref<56x128xf32, #tpu.memory_space<vmem>>, vector<56x128xf32>
    tpu.vector_store %arg4[%c0_6, %c0_7], %7 {strides = array<i32>} : memref<56x128xf32, #tpu.memory_space<vmem>>, vector<56x128xf32>,
    return
  }
  func.func @transform_0(%arg0: i32) -> (i32, i32) {
    %c0_i32 = arith.constant 0 : i32
    %c0_i32_0 = arith.constant 0 : i32
    return %arg0, %c0_i32 : i32, i32
  }
  func.func @transform_1(%arg0: i32) -> (i32, i32) {
    %c0_i32 = arith.constant 0 : i32
    %c0_i32_0 = arith.constant 0 : i32
    %c0_i32_1 = arith.constant 0 : i32
    return %c0_i32, %c0_i32_0 : i32, i32
  }
  func.func @transform_2(%arg0: i32) -> (i32, i32) {
    %c0_i32 = arith.constant 0 : i32
    %c0_i32_0 = arith.constant 0 : i32
    %c0_i32_1 = arith.constant 0 : i32
    return %c0_i32, %c0_i32_0 : i32, i32
  }
  func.func @transform_3(%arg0: i32) -> (i32, i32) {
    %c0_i32 = arith.constant 0 : i32
    %c0_i32_0 = arith.constant 0 : i32
    return %arg0, %c0_i32 : i32, i32
  }
}

</mosaic_0001>

<bundles_post_ra>
// kernel: tpu_custom_call.1
= control target key start
LH: loop header
LB: loop body
LE: loop exit
PB: predicated region body
PF: predicated region fallthrough
CT: control target
= control target key end

     0   :  { %8 = vsyncpa [#allocation3], 0  ;;  %s344_s0 = inlined_call_operand.hbm [shape: f32[56,96], index: 0, kind: input, shape index: {}]   ;;  %s345_s1 = inlined_call_operand.hbm [shape: f32[96,128], index: 1, kind: input, shape index: {}]   ;;  %s346_s2 = inlined_call_operand.vmem [shape: f32[1,128], index: 2, kind: input, shape index: {}]   ;;  %s347_s3 = inlined_call_operand.hbm [shape: f32[56,128], index: 3, kind: output, shape index: {}]  }
   0x1   :  { %9 = vsyncpa [#allocation6], 0 }
   0x2   :  { %10 = vsyncpa [#allocation4], 0  ;;  %s15_s14 = sshll.u32 %s344_s0, 4  ;;  %s291_s15 = smov [#allocation2]   ;;  %s16_s14 = int_to_ptr.hbm [resolvable:$true] %s15_s14 }
   0x3   :  { %s17_s16 = sshll.u32 %s291_s15, 4  ;;  %s28_s19 = sshll.u32 %s345_s1, 4  ;;  %s18_s16 = int_to_ptr.vmem [resolvable:$true] %s17_s16  ;;  %s29_s19 = int_to_ptr.hbm [resolvable:$true] %s28_s19 }
   0x4   :  { %s292_s20 = smov 128   ;;  %s293_s21 = smov 8  }
   0x5   :  { %23 = dma.hbm_to_vmem [thread:$0]  %s16_s14, 896, %s18_s16, [#allocation3], %s292_s20, %s292_s20, %s293_s21  }
   0x6   :  { %s294_s22 = smov [#allocation5]  }
   0x7   :  { %s30_s23 = sshll.u32 %s294_s22, 4  ;;  %s31_s23 = int_to_ptr.vmem [resolvable:$true] %s30_s23 }
   0x8   :  { %36 = dma.hbm_to_vmem [thread:$0]  %s29_s19, 1536, %s31_s23, [#allocation6], %s292_s20, %s292_s20, %s293_s21  }
   0x9   :  { %285 = dma.done.wait [#allocation3], 896  }
   0xa   :  { %286 = vsyncadd [#allocation3], 4294966400 }
   0xb   :  { %287 = dma.done.wait [#allocation6], 1536  }
   0xc   :  { %288 = vsyncadd [#allocation6], 4294965760  ;;  %v72_v0 = vld [vmem:[#allocation5 + $0x58] sm:$0xff]  ;;  %v71_v1 = vld [vmem:[#allocation5 + $0x50] sm:$0xff]  ;;  %vm77_vm0 = vcmask 785408   ;;  %s295_s24 = smov [#allocation7]  }
   0xd   :  { %172 = vmatpush.msra.mxu2 %v72_v0  ;;  %173 = vmatpush.msra.mxu3 %v72_v0  ;;  %v70_v2 = vld [vmem:[#allocation5 + $0x48] sm:$0xff]  ;;  %v69_v3 = vld [vmem:[#allocation5 + $0x40] sm:$0xff]  ;;  %v68_v4 = vld [vmem:[#allocation5 + $0x38] sm:$0xff]  ;;  %s148_s25 = sshll.u32 %s295_s24, 4  ;;  %s149_s25 = int_to_ptr.vmem [resolvable:$true] %s148_s25 }
   0xe   :  { %103 = vmatpush.msra.mxu0 %v72_v0  ;;  %171 = vmatpush.msra.mxu1 %v72_v0  ;;  %v67_v5 = vld [vmem:[#allocation5 + $0x30] sm:$0xff]  ;;  %v66_v6 = vld [vmem:[#allocation5 + $0x28] sm:$0xff]  ;;  %v65_v7 = vld [vmem:[#allocation5 + $0x20] sm:$0xff] }
   0xf   :  { %175 = vmatpush.msra.mxu2 %v71_v1  ;;  %176 = vmatpush.msra.mxu3 %v71_v1  ;;  %v64_v8 = vld [vmem:[#allocation5 + $0x18] sm:$0xff]  ;;  %v63_v9 = vld [vmem:[#allocation5 + $0x10] sm:$0xff]  ;;  %v50_v10 = vld [vmem:[#allocation2 + $0x18] sm:$0xff] }
  0x10   :  { %104 = vmatpush.msra.mxu0 %v71_v1  ;;  %174 = vmatpush.msra.mxu1 %v71_v1  ;;  %v52_v11 = vld [vmem:[#allocation2 + $0x28] sm:$0xff]  ;;  %v62_v12 = vld [vmem:[#allocation5 + $0x8] sm:$0xff]  ;;  %v49_v14 = vld [vmem:[#allocation2 + $0x10] sm:$0xff]  ;;  %v57_v16 = vmax.f32 %v50_v10, 0.0 }
  0x11   :  { %178 = vmatpush.msra.mxu2 %v70_v2  ;;  %179 = vmatpush.msra.mxu3 %v70_v2  ;;  %v47_v13 = vld [vmem:[#allocation2] sm:$0xff]  ;;  %v61_v15 = vld [vmem:[#allocation5] sm:$0xff]  ;;  %v59_v17 = vmax.f32 %v52_v11, 0.0  ;;  %v56_v19 = vmax.f32 %v49_v14, 0.0  ;;  %v53_v21 = vld [vmem:[#allocation2 + $0x30] sm:$0xff] }
  0x12   :  { %105 = vmatpush.msra.mxu0 %v70_v2  ;;  %177 = vmatpush.msra.mxu1 %v70_v2  ;;  %v54_v18 = vmax.f32 %v47_v13, 0.0  ;;  %v51_v20 = vld [vmem:[#allocation2 + $0x20] sm:$0xff]  ;;  %v48_v22 = vld [vmem:[#allocation2 + $0x8] sm:$0xff]  ;;  %v60_v24 = vmax.f32 %v53_v21, 0.0 }
  0x13   :  { %181 = vmatpush.msra.mxu2 %v69_v3  ;;  %182 = vmatpush.msra.mxu3 %v69_v3  ;;  %v58_v23 = vmax.f32 %v51_v20, 0.0  ;;  %v55_v25 = vmax.f32 %v48_v22, 0.0  ;;  %v212_v26 = vld [vmem:[%s346_s2] ss:$0 sm:$0xff]  ;;  %s150_s2 = sshll.u32 %s347_s3, 4  ;;  %s151_s2 = int_to_ptr.hbm [resolvable:$true] %s150_s2 }
  0x14   :  { %106 = vmatpush.msra.mxu0 %v69_v3  ;;  %180 = vmatpush.msra.mxu1 %v69_v3 }
  0x15   :  { %184 = vmatpush.msra.mxu2 %v68_v4  ;;  %185 = vmatpush.msra.mxu3 %v68_v4 }
  0x16   :  { %107 = vmatpush.msra.mxu0 %v68_v4  ;;  %183 = vmatpush.msra.mxu1 %v68_v4 }
  0x17   :  { %187 = vmatpush.msra.mxu2 %v67_v5  ;;  %188 = vmatpush.msra.mxu3 %v67_v5 }
  0x18   :  { %108 = vmatpush.msra.mxu0 %v67_v5  ;;  %186 = vmatpush.msra.mxu1 %v67_v5 }
  0x19   :  { %190 = vmatpush.msra.mxu2 %v66_v6  ;;  %191 = vmatpush.msra.mxu3 %v66_v6 }
  0x1a   :  { %109 = vmatpush.msra.mxu0 %v66_v6  ;;  %189 = vmatpush.msra.mxu1 %v66_v6 }
  0x1b   :  { %193 = vmatpush.msra.mxu2 %v65_v7  ;;  %194 = vmatpush.msra.mxu3 %v65_v7 }
  0x1c   :  { %110 = vmatpush.msra.mxu0 %v65_v7  ;;  %192 = vmatpush.msra.mxu1 %v65_v7 }
  0x1d   :  { %196 = vmatpush.msra.mxu2 %v64_v8  ;;  %197 = vmatpush.msra.mxu3 %v64_v8 }
  0x1e   :  { %111 = vmatpush.msra.mxu0 %v64_v8  ;;  %195 = vmatpush.msra.mxu1 %v64_v8 }
  0x1f   :  { %199 = vmatpush.msra.mxu2 %v63_v9  ;;  %200 = vmatpush.msra.mxu3 %v63_v9 }
  0x20   :  { %112 = vmatpush.msra.mxu0 %v63_v9  ;;  %198 = vmatpush.msra.mxu1 %v63_v9 }
  0x21   :  { %202 = vmatpush.msra.mxu2 %v62_v12  ;;  %203 = vmatpush.msra.mxu3 %v62_v12 }
  0x22   :  { %113 = vmatpush.msra.mxu0 %v62_v12  ;;  %201 = vmatpush.msra.mxu1 %v62_v12 }
  0x23   :  { %205 = vmatpush.msra.mxu2 %v61_v15  ;;  %206 = vmatpush.msra.mxu3 %v61_v15 }
  0x24   :  { %167 = vmatmul.msk.f32.vlgmr.msra.gmra.mxu2 %vm77_vm0, %v57_v16  ;;  %169 = vmatmul.msk.f32.vlgmr.msra.gmra.mxu3 %vm77_vm0, %v59_v17 }
  0x25   :  { %114 = vmatpush.msra.mxu0 %v61_v15  ;;  %204 = vmatpush.msra.mxu1 %v61_v15 }
  0x26   :  { %164 = vmatmul.msk.f32.vlgmr.msra.gmra.mxu0 %vm77_vm0, %v54_v18  ;;  %166 = vmatmul.msk.f32.vlgmr.msra.gmra.mxu1 %vm77_vm0, %v56_v19 }
  0x2c   :  { %168 = vmatmul.msk.f32.gmra.mxu2 %vm77_vm0, %v58_v23  ;;  %170 = vmatmul.msk.f32.gmra.mxu3 %vm77_vm0, %v60_v24 }
  0x2e   :  { %165 = vmatmul.msk.f32.gmra.mxu0 %vm77_vm0, %v55_v25 }
  0xa3   :  { %v116_v27 = vpop.f32.mrf.mxu0  ;;  %v122_v28 = vpop.f32.mrf.mxu1 }
  0xa4   :  { %v117_v29 = vadd.f32 %v212_v26, %v116_v27  ;;  %v123_v30 = vadd.f32 %v212_v26, %v122_v28 }
  0xa6   :  { %137 = vst [vmem:[#allocation7] sm:$0xff] %v117_v29 }
  0xa7   :  { %v125_v31 = vpop.f32.mrf.mxu2  ;;  %v131_v32 = vpop.f32.mrf.mxu3  ;;  %139 = vst [vmem:[#allocation7 + $0x10] sm:$0xff] %v123_v30 }
  0xa8   :  { %v126_v33 = vadd.f32 %v212_v26, %v125_v31  ;;  %v132_v34 = vadd.f32 %v212_v26, %v131_v32 }
  0xaa   :  { %140 = vst [vmem:[#allocation7 + $0x18] sm:$0xff] %v126_v33 }
  0xab   :  { %142 = vst [vmem:[#allocation7 + $0x28] sm:$0xff] %v132_v34  ;;  %v119_v35 = vpop.f32.mrf.mxu0 }
  0xac   :  { %v120_v36 = vadd.f32 %v212_v26, %v119_v35 }
  0xae   :  { %138 = vst [vmem:[#allocation7 + $0x8] sm:$0xff] %v120_v36 }
  0xaf   :  { %v128_v37 = vpop.f32.mrf.mxu2  ;;  %v134_v38 = vpop.f32.mrf.mxu3 }
  0xb0   :  { %v129_v39 = vadd.f32 %v212_v26, %v128_v37  ;;  %v135_v40 = vadd.f32 %v212_v26, %v134_v38 }
  0xb2   :  { %141 = vst [vmem:[#allocation7 + $0x20] sm:$0xff] %v129_v39 }
  0xb3   :  { %143 = vst [vmem:[#allocation7 + $0x30] sm:$0xff] %v135_v40 }
  0xb4   :  { %156 = dma.vmem_to_hbm [thread:$0]  %s149_s25, 896, %s151_s2, [#allocation4], %s292_s20, %s292_s20, %s293_s21  }
  0xb5   :  { %289 = dma.done.wait [#allocation4], 896  }
  0xb6   :  { %290 = vsyncadd [#allocation4], 4294966400 }
  0xb7   :  { %161 = vsyncpa [#allocation3], 1 }
  0xb8   :  { %162 = vsyncpa [#allocation6], 1 }
  0xb9   :  { %163 = vsyncpa [#allocation4], 1 }

</bundles_post_ra>
